<compile_context>
chip_gen: v5e
topology: v5e:2x2
jax: 0.10.0
libtpu: 0.0.40
codegen_flags: <defaults>
</compile_context>

<pallas_src>
import jax
import jax.numpy as jnp
import numpy as np
from jax.experimental import pallas as pl
from jax.experimental.pallas import tpu as pltpu


def _round_up(x, m):
    return (x + m - 1) // m * m


def _padded_tile_bytes(shape, dtype):
    """VMEM footprint of one buffer of `shape`, including (sublane, lane) padding."""
    itemsize = jnp.dtype(dtype).itemsize
    dims = list(shape)
    if len(dims) >= 1:
        dims[-1] = _round_up(dims[-1], 128)                 # lane dim -> 128
    if len(dims) >= 2:
        sublane = 8 * max(1, 4 // itemsize)                 # 8 f32 / 16 bf16
        dims[-2] = _round_up(dims[-2], sublane)
    return int(np.prod(dims)) * itemsize


def _patch_embed_kernel(p_ref, w_ref, b_ref, o_ref):
    # p_ref: (Rn, K) bf16 patch pixels   (one row tile of one image)
    # w_ref: (K, E)  bf16 projection     (resident, constant index)
    # b_ref: (1, E)  f32 bias            (resident, constant index)
    # o_ref: (Rn, E) patch embeddings
    acc = jnp.dot(p_ref[...], w_ref[...], preferred_element_type=jnp.float32)
    o_ref[...] = (acc + b_ref[...]).astype(o_ref.dtype)


def flexi_patch_embed_forward(x_nchw, weight, bias, patch_size, *,
                              rows_per_step=128, out_dtype=None):
    """FlexiPatchEmbed.forward (eval mode, base patch size, flatten=True, Identity norm).

    Input is NCHW (PyTorch conv convention).  Output is (B, N, E) with
    N = (H/ph)*(W/pw), patch index = hp*Wp + wp (matches flatten(2).transpose(1,2)).
    """
    B, C, H, W = x_nchw.shape
    ph, pw = patch_size
    E = weight.shape[0]
    assert H % ph == 0 and W % pw == 0, "image size must be divisible by patch size"
    Hp, Wp = H // ph, W // pw
    N = Hp * Wp
    K = C * ph * pw
    out_dtype = out_dtype if out_dtype is not None else x_nchw.dtype

    # --- im2col, fused with the bf16 cast (one XLA pass over x) -------------
    # (B,C,H,W) -> (B,C,Hp,ph,Wp,pw) -> (B,Hp,Wp,C,ph,pw) -> (B,N,K), K-major
    # order (c, y, x) matching weight.reshape(E, K).
    x6 = x_nchw.reshape(B, C, Hp, ph, Wp, pw)
    patches = jnp.transpose(x6, (0, 2, 4, 1, 3, 5)).reshape(B, N, K)
    patches = patches.astype(jnp.bfloat16)

    # (E, C, ph, pw) -> (K, E) bf16; bias -> (1, E) f32.
    w_t = jnp.transpose(weight.reshape(E, K), (1, 0)).astype(jnp.bfloat16)
    b2 = bias.reshape(1, E).astype(jnp.float32)

    # --- row tiling over the flattened patch index --------------------------
    # Rn rows (multiple of 8) per grid step; tail rows padded with zeros and
    # sliced off after the call.  Multiple steps per image -> DMA/compute
    # overlap and work for both v7x TensorCores even at B == 1.
    Rn = _round_up(min(rows_per_step, N), 8)
    N_pad = _round_up(N, Rn)
    if N_pad != N:
        patches = jnp.pad(patches, ((0, 0), (0, N_pad - N), (0, 0)))
    grid = (B, N_pad // Rn)

    # --- VMEM budget (padded tile accounting, 2 buffers per pipelined block) -
    p_blk = _padded_tile_bytes((Rn, K), jnp.bfloat16)
    o_blk = _padded_tile_bytes((Rn, E), out_dtype)
    w_res = _padded_tile_bytes((K, E), jnp.bfloat16)
    b_res = _padded_tile_bytes((1, E), jnp.float32)
    need = 2 * (p_blk + o_blk + w_res + b_res) + _padded_tile_bytes((Rn, E), jnp.float32)
    vmem_limit = int(min(64 * 2**20, max(2 * need, 16 * 2**20)))

    cost = pl.CostEstimate(
        flops=2 * B * N_pad * K * E,
        transcendentals=0,
        bytes_accessed=(B * N_pad * K * 2 + K * E * 2 + E * 4
                        + B * N_pad * E * jnp.dtype(out_dtype).itemsize),
    )

    out = pl.pallas_call(
        _patch_embed_kernel,
        out_shape=jax.ShapeDtypeStruct((B, N_pad, E), out_dtype),
        grid_spec=pltpu.PrefetchScalarGridSpec(
            num_scalar_prefetch=0,
            grid=grid,
            in_specs=[
                # One row tile of patches; batch dim squeezed; minor dim K is
                # the full extent -> lane-dense, layout-legal.
                pl.BlockSpec((None, Rn, K), lambda b, r: (b, r, 0)),
                # Full weight, constant index -> DMA'd once, stays resident.
                pl.BlockSpec((K, E), lambda b, r: (0, 0)),
                # Bias row, resident.
                pl.BlockSpec((1, E), lambda b, r: (0, 0)),
            ],
            out_specs=pl.BlockSpec((None, Rn, E), lambda b, r: (b, r, 0)),
        ),
        compiler_params=pltpu.CompilerParams(
            dimension_semantics=("parallel", "parallel"),
            vmem_limit_bytes=vmem_limit,
        ),
        cost_estimate=cost,
    )(patches, w_t, b2)

    if N_pad != N:
        out = out[:, :N, :]
    return out


if __name__ == "__main__":
    # Small shapes consistent with the module: img_size=16, patch_size=2,
    # in_chans=4, embed_dim=32, batch=2.
    B, C, H, W = 2, 4, 16, 16
    ph, pw = 2, 2
    E = 32

    key = jax.random.PRNGKey(0)
    kx, kw, kb = jax.random.split(key, 3)
    x = jax.random.normal(kx, (B, C, H, W), dtype=jnp.float32)
    # Deterministic synthetic params (nn.Conv2d(in_chans, embed_dim, k=p, stride=p, bias=True)).
    weight = jax.random.normal(kw, (E, C, ph, pw), dtype=jnp.float32) * 0.02
    bias = jax.random.normal(kb, (E,), dtype=jnp.float32) * 0.02

    y = flexi_patch_embed_forward(x, weight, bias, (ph, pw))
    y = jax.block_until_ready(y)

    # Reference: plain JAX conv2d + flatten/transpose (same semantics as PyTorch forward).
    ref = jax.lax.conv_general_dilated(
        x, weight, window_strides=(ph, pw), padding="VALID",
        dimension_numbers=("NCHW", "OIHW", "NCHW"),
    )
    ref = ref + bias[None, :, None, None]
    ref = ref.reshape(B, E, -1).transpose(0, 2, 1)  # (B, N, E)

    assert y.shape == (B, (H // ph) * (W // pw), E), y.shape
    # bf16 MXU inputs with f32 accumulation -> documented precision choice.
    np.testing.assert_allclose(np.asarray(y), np.asarray(ref), rtol=1e-2, atol=1e-2)
    print("KERNEL_OK")
</pallas_src>

<mosaic_0001>
module attributes {stable_mosaic.version = 11 : i64} {
  func.func @_patch_embed_kernel(%arg0: i32, %arg1: i32, %arg2: memref<1x64x16xbf16, #tpu.memory_space<vmem>>, %arg3: memref<16x32xbf16, #tpu.memory_space<vmem>>, %arg4: memref<1x32xf32, #tpu.memory_space<vmem>>, %arg5: memref<1x64x32xf32, #tpu.memory_space<vmem>>) attributes {dimension_semantics = [#tpu.dimension_semantics<parallel>, #tpu.dimension_semantics<parallel>], iteration_bounds = array<i64: 2, 1>, scalar_prefetch = 0 : i64, scratch_operands = 0 : i64, tpu.core_type = #tpu.core_type<tc>, window_params = [{transform_indices = @transform_0, window_bounds = array<i64: 1, 64, 16>}, {pipeline_mode = #tpu.pipeline_mode<synchronous>, transform_indices = @transform_1, window_bounds = array<i64: 16, 32>}, {pipeline_mode = #tpu.pipeline_mode<synchronous>, transform_indices = @transform_2, window_bounds = array<i64: 1, 32>}, {transform_indices = @transform_3, window_bounds = array<i64: 1, 64, 32>}]} {
    %c0 = arith.constant 0 : index
    %c0_0 = arith.constant 0 : index
    %c0_1 = arith.constant 0 : index
    %0 = vector.load %arg2[%c0, %c0_0, %c0_1] : memref<1x64x16xbf16, #tpu.memory_space<vmem>>, vector<1x64x16xbf16>
    %1 = vector.shape_cast %0 : vector<1x64x16xbf16> to vector<64x16xbf16>
    %c0_2 = arith.constant 0 : index
    %c0_3 = arith.constant 0 : index
    %2 = vector.load %arg3[%c0_2, %c0_3] : memref<16x32xbf16, #tpu.memory_space<vmem>>, vector<16x32xbf16>
    %cst = arith.constant dense<0.000000e+00> : vector<64x32xf32>
    %3 = tpu.matmul %1, %2, %cst {dimension_numbers = #tpu.dot_dimension_numbers<[1], [0], [0], [1], [0, 0, 1, 1], [], []>} : vector<64x16xbf16>, vector<16x32xbf16>, vector<64x32xf32> -> vector<64x32xf32>
    %c0_4 = arith.constant 0 : index
    %c0_5 = arith.constant 0 : index
    %4 = vector.load %arg4[%c0_4, %c0_5] : memref<1x32xf32, #tpu.memory_space<vmem>>, vector<1x32xf32>
    %5 = vector.broadcast %4 : vector<1x32xf32> to vector<64x32xf32>
    %6 = arith.addf %3, %5 : vector<64x32xf32>
    %c0_6 = arith.constant 0 : index
    %c0_7 = arith.constant 0 : index
    %c0_8 = arith.constant 0 : index
    %7 = vector.load %arg5[%c0_6, %c0_7, %c0_8] : memref<1x64x32xf32, #tpu.memory_space<vmem>>, vector<1x64x32xf32>
    %8 = vector.shape_cast %7 : vector<1x64x32xf32> to vector<64x32xf32>
    %9 = vector.shape_cast %6 : vector<64x32xf32> to vector<1x64x32xf32>
    tpu.vector_store %arg5[%c0_6, %c0_7, %c0_8], %9 {strides = array<i32>} : memref<1x64x32xf32, #tpu.memory_space<vmem>>, vector<1x64x32xf32>,
    return
  }
  func.func @transform_0(%arg0: i32, %arg1: i32) -> (i32, i32, i32) {
    %c0_i32 = arith.constant 0 : i32
    %c0_i32_0 = arith.constant 0 : i32
    return %arg0, %arg1, %c0_i32 : i32, i32, i32
  }
  func.func @transform_1(%arg0: i32, %arg1: i32) -> (i32, i32) {
    %c0_i32 = arith.constant 0 : i32
    %c0_i32_0 = arith.constant 0 : i32
    %c0_i32_1 = arith.constant 0 : i32
    return %c0_i32, %c0_i32_0 : i32, i32
  }
  func.func @transform_2(%arg0: i32, %arg1: i32) -> (i32, i32) {
    %c0_i32 = arith.constant 0 : i32
    %c0_i32_0 = arith.constant 0 : i32
    %c0_i32_1 = arith.constant 0 : i32
    return %c0_i32, %c0_i32_0 : i32, i32
  }
  func.func @transform_3(%arg0: i32, %arg1: i32) -> (i32, i32, i32) {
    %c0_i32 = arith.constant 0 : i32
    %c0_i32_0 = arith.constant 0 : i32
    return %arg0, %arg1, %c0_i32 : i32, i32, i32
  }
}

</mosaic_0001>

<bundles_post_ra>
// kernel: tpu_custom_call.1
= control target key start
LH: loop header
LB: loop body
LE: loop exit
PB: predicated region body
PF: predicated region fallthrough
CT: control target
= control target key end

     0   :  { %s503_s12 = smov 0   ;;  %s505_s13 = smov 0   ;;  %s550_s0 = inlined_call_operand.vmem [shape: bf16[2,64,16], index: 0, kind: input, shape index: {}]   ;;  %s551_s1 = inlined_call_operand.vmem [shape: bf16[16,32], index: 1, kind: input, shape index: {}]   ;;  %s552_s2 = inlined_call_operand.vmem [shape: f32[1,32], index: 2, kind: input, shape index: {}]   ;;  %s553_s3 = inlined_call_operand.vmem [shape: f32[2,64,32], index: 3, kind: output, shape index: {}]  }
   0x1   :  { %s507_s14 = smov 0  }
   0x2 LB: > { %s25_s15 = sadd.s32 1, %s477_s13  ;;  %p393_p0 = scmp.ge.s32.totalorder %s481_s14, 1  ;;  %s481_s14 = sphi %s507_s14, %s13_s14   ;;  %s477_s13 = sphi %s505_s13, %s555_s13   ;;  %s473_s12 = sphi %s503_s12, %s554_s12  }
   0x3   : > { %p27_p1 = scmp.ge.s32.totalorder %s25_s15, 2  ;;  %p158_p2 = scmp.lt.s32.totalorder %s481_s14, 3 }
   0x5   : > { %s557_s15 = smov (%p27_p1, %s25_s15), 0  ;;  %p159_p3 = pnand %p393_p0, %p158_p2 }
   0x6   : > { %p191_p4 = scmp.lt.s32.totalorder (!%p159_p3), %s473_s12, 1 }
   0x7   : > { %162 = sbr.rel (%p159_p3) target bundleno = 161 (0xa1), region = 32 }
   0xc   : > { %v430_v0 = vld [vmem:[%s551_s1] sm:$0xff]  ;;  %s559_s12 = smov (!%p191_p4, %s473_s12), 1  ;;  %vm251_vm0 = vcmask 130048   ;;  %vm293_vm1 = vcmask 261120  }
   0xd   : > { %271 = vmatpush.bf16.msra.mxu0 %v430_v0  ;;  %431 = vmatpush.bf16.msra.mxu1 %v430_v0  ;;  %s424_s18 = sshll.u32 %s559_s12, 5  ;;  %s425_s22 = sshll.u32 %s559_s12, 6  ;;  %v458_v5 = vld [vmem:[%s552_s2] ss:$0 sm:$0xff] }
   0xe   : > { %432 = vmatpush.bf16.msra.mxu2 %v430_v0  ;;  %433 = vmatpush.bf16.msra.mxu3 %v430_v0  ;;  %s198_s21 = scalar_lea.vmem %s550_s0, %s424_s18  ;;  %s208_s27 = scalar_lea.vmem %s553_s3, %s425_s22 }
   0xf   : > { %v426_v1 = vld [vmem:[%s198_s21] sm:$0xff]  ;;  %v427_v2 = vld [vmem:[%s198_s21 + $0x8] sm:$0xff]  ;;  %v428_v3 = vld [vmem:[%s198_s21 + $0x10] sm:$0xff] }
  0x10   : > { %v429_v4 = vld [vmem:[%s198_s21 + $0x18] sm:$0xff]  ;;  %418 = vmatmul.msk.bf16.vlgmr.msra.gmra.mxu0 %vm251_vm0, %v426_v1  ;;  %419 = vmatmul.msk.bf16.vlgmr.msra.gmra.mxu1 %vm251_vm0, %v427_v2 }
  0x11   : > { %420 = vmatmul.msk.bf16.vlgmr.msra.gmra.mxu2 %vm251_vm0, %v428_v3  ;;  %421 = vmatmul.msk.bf16.vlgmr.msra.gmra.mxu3 %vm251_vm0, %v429_v4 }
  0x8d   : > { %v273_v6 = vpop.f32.mrf.mxu0  ;;  %v278_v7 = vpop.f32.mrf.mxu1 }
  0x8e   : > { %v274_v8 = vadd.f32 %v458_v5, %v273_v6  ;;  %v279_v9 = vadd.f32 %v458_v5, %v278_v7 }
  0x90   : > { %294 = vst.msk [vmem:[%s208_s27] sm:$0xff] %vm293_vm1, %v274_v8 }
  0x91   : > { %296 = vst.msk [vmem:[%s208_s27 + $0x10] sm:$0xff] %vm293_vm1, %v279_v9 }
  0x94   : > { %v283_v10 = vpop.f32.mrf.mxu2  ;;  %v288_v11 = vpop.f32.mrf.mxu3 }
  0x95   : > { %v284_v12 = vadd.f32 %v458_v5, %v283_v10  ;;  %v289_v13 = vadd.f32 %v458_v5, %v288_v11  ;;  %v275_v14 = vpop.f32.mrf.mxu0  ;;  %v280_v15 = vpop.f32.mrf.mxu1 }
  0x96   : > { %v276_v16 = vadd.f32 %v458_v5, %v275_v14  ;;  %v281_v17 = vadd.f32 %v458_v5, %v280_v15 }
  0x97   : > { %298 = vst.msk [vmem:[%s208_s27 + $0x20] sm:$0xff] %vm293_vm1, %v284_v12 }
  0x98   : > { %300 = vst.msk [vmem:[%s208_s27 + $0x30] sm:$0xff] %vm293_vm1, %v289_v13 }
  0x99   : > { %295 = vst.msk [vmem:[%s208_s27 + $0x8] sm:$0xff] %vm293_vm1, %v276_v16 }
  0x9a   : > { %297 = vst.msk [vmem:[%s208_s27 + $0x18] sm:$0xff] %vm293_vm1, %v281_v17 }
  0x9c   : > { %v285_v18 = vpop.f32.mrf.mxu2  ;;  %v290_v19 = vpop.f32.mrf.mxu3 }
  0x9d   : > { %v286_v20 = vadd.f32 %v458_v5, %v285_v18  ;;  %v291_v21 = vadd.f32 %v458_v5, %v290_v19 }
  0x9f   : > { %299 = vst.msk [vmem:[%s208_s27 + $0x28] sm:$0xff] %vm293_vm1, %v286_v20 }
  0xa0   : > { %301 = vst.msk [vmem:[%s208_s27 + $0x38] sm:$0xff] %vm293_vm1, %v291_v21 }
  0xa1 PF: > { %s13_s14 = sadd.s32 1, %s481_s14   ;;  %s554_s12 = smov %s477_s13 }
  0xa2   : > { %p10_p5 = scmp.ge.s32.totalorder %s13_s14, 4   ;;  %s555_s13 = smov %s557_s15 }
  0xa4   :  { %12 = sbr.rel (!%p10_p5) target bundleno = 2 (0x2), region = 62 }

</bundles_post_ra>
